<compile_context>
chip_gen: v6e
topology: v6e:2x2x1
jax: 0.10.0
libtpu: 0.0.40
codegen_flags: <defaults>
</compile_context>

<pallas_src>
import jax
import jax.numpy as jnp
from jax.experimental import pallas as pl
from jax.experimental.pallas import tpu as pltpu

# Problem sizes (small, consistent with the module's forward)
BATCH = 2          # batch_size
HIDDEN = 32        # target_hidden_size
SEQ = 8            # encoder sequence length
LABELS = 16        # target_labels_num
LAYERS = 2         # rnn_layers


# ------------------------------- Pallas kernel -------------------------------
def decoder_step_kernel(ids_ref, state_ref, w0_ref, w1_ref, b01_ref,
                        wh_ref, bh_ref, enc_t_ref, enc_f_ref, out_ref):
    """Fused one-hot embedding + 2-layer LSTM step + dot attention + heads.

    ids_ref   : (B, 1)      int32 - target label ids
    state_ref : (B, 4H)     f32   - lane-packed [h0 | h1 | c0 | c1]
    w0_ref    : (L+H, 4H)   f32   - [embedding @ W_ih_l0 ; W_hh_l0]
    w1_ref    : (2H, 4H)    f32   - [W_ih_l1 ; W_hh_l1]
    b01_ref   : (2, 4H)     f32   - per-layer gate bias (b_ih + b_hh)
    wh_ref    : (3H, H)     f32   - rows 0:2H Linear_concat, 2H:3H Linear_out (zero-padded)
    bh_ref    : (2, H)      f32   - row 0 bc, row 1 bo (padded with -1e30)
    enc_t_ref : (H, B*S)    f32   - encoder outputs, (h, b*S+s) layout
    enc_f_ref : (B*S, H)    f32   - encoder outputs, (b*S+s, h) layout
    out_ref   : (B, 6H)     f32   - [h0n | h1n | c0n | c1n | logits | probs]
    """
    B, H, S, L = BATCH, HIDDEN, SEQ, LABELS
    f32 = jnp.float32

    state = state_ref[...]                                   # (B, 4H)
    h0 = state[:, 0 * H:1 * H]
    h1 = state[:, 1 * H:2 * H]
    c0 = state[:, 2 * H:3 * H]
    c1 = state[:, 3 * H:4 * H]

    # Embedding lookup as a one-hot that rides the layer-0 gate matmul
    # (emb @ W_ih_l0 folded into w0 at pack time). Dropout(p=0) = identity.
    onehot = (jax.lax.broadcasted_iota(jnp.int32, (B, L), 1)
              == ids_ref[...]).astype(f32)                   # (B, L)

    def lstm_layer(xh, w_ref_l, layer, c_prev):
        # One MXU dot per layer: (B, K) @ (K, 4H); gate order (i, f, g, o).
        gates = (jnp.dot(xh, w_ref_l[...], preferred_element_type=f32)
                 + b01_ref[pl.ds(layer, 1), :])              # (B, 4H)
        sg = jax.nn.sigmoid(gates)                           # full-lane EUP
        th = jnp.tanh(gates)
        i = sg[:, 0 * H:1 * H]
        f = sg[:, 1 * H:2 * H]
        g = th[:, 2 * H:3 * H]
        o = sg[:, 3 * H:4 * H]
        c_new = f * c_prev + i * g
        h_new = o * jnp.tanh(c_new)
        return h_new, c_new

    h0n, c0n = lstm_layer(jnp.concatenate([onehot, h0], axis=1), w0_ref, 0, c0)
    h1n, c1n = lstm_layer(jnp.concatenate([h0n, h1], axis=1), w1_ref, 1, c1)

    # Dot attention as block-diagonal flat matmuls:
    # scores[b, b'*S+s] = h1n[b] . enc[s, b'];  keep only the b' == b block.
    scores = jnp.dot(h1n, enc_t_ref[...], preferred_element_type=f32)   # (B, B*S)
    row = jax.lax.broadcasted_iota(jnp.int32, (B, B * S), 0)
    col = jax.lax.broadcasted_iota(jnp.int32, (B, B * S), 1)
    in_block = (col >= row * S) & (col < row * S + S)
    scores = jnp.where(in_block, scores, -1e30)
    scores = scores - jnp.max(scores, axis=-1, keepdims=True)
    p = jnp.exp(scores)                                      # masked lanes -> 0
    attn = p / jnp.sum(p, axis=-1, keepdims=True)            # softmax over S
    context = jnp.dot(attn, enc_f_ref[...], preferred_element_type=f32)  # (B, H)

    # Linear_concat on [h1n | context] (single dot) + tanh
    concat_out = jnp.tanh(
        jnp.dot(jnp.concatenate([h1n, context], axis=1),
                wh_ref[pl.ds(0, 2 * H), :], preferred_element_type=f32)
        + bh_ref[pl.ds(0, 1), :])                            # (B, H)

    # Linear_out (weights zero-padded to H lanes, bias -1e30 padded) + softmax(dim=1)
    logits_full = (jnp.dot(concat_out, wh_ref[pl.ds(2 * H, H), :],
                           preferred_element_type=f32)
                   + bh_ref[pl.ds(1, 1), :])                 # (B, H), pad lanes ~ -1e30
    m = jnp.max(logits_full, axis=-1, keepdims=True)
    e = jnp.exp(logits_full - m)                             # pad lanes -> 0
    probs_full = e / jnp.sum(e, axis=-1, keepdims=True)

    out_ref[...] = jnp.concatenate(
        [h0n, h1n, c0n, c1n, logits_full, probs_full], axis=1)   # (B, 6H)


# --------------------- host-side packing (hoisted, once) ----------------------
def pack_decoder(params, encoder_outputs):
    """Pack weights + encoder layouts ONCE per decode session."""
    H, L, S, B = HIDDEN, LABELS, SEQ, BATCH
    f32 = jnp.float32
    emb = params["embedding"].astype(f32)                                  # (L, H)
    w0 = jnp.concatenate([emb @ params["wih0"], params["whh0"]], axis=0)   # (L+H, 4H)
    w1 = jnp.concatenate([params["wih1"], params["whh1"]], axis=0)         # (2H, 4H)
    b01 = jnp.concatenate([params["b0"], params["b1"]], axis=0)            # (2, 4H)
    wo_pad = jnp.zeros((H, H), f32).at[:, :L].set(params["wo"])
    wh = jnp.concatenate([params["wc"], wo_pad], axis=0)                   # (3H, H)
    bo_pad = jnp.full((1, H), -1e30, f32).at[:, :L].set(params["bo"])
    bh = jnp.concatenate([params["bc"], bo_pad], axis=0)                   # (2, H)
    enc_f = jnp.transpose(encoder_outputs, (1, 0, 2)).reshape(B * S, H)    # (B*S, H)
    enc_t = enc_f.T                                                        # (H, B*S)
    return (w0, w1, b01, wh, bh, enc_t, enc_f)


def pack_state(h, c):
    """(LAYERS,B,H) x2 -> lane-packed (B, 4H) = [h0 | h1 | c0 | c1]."""
    return jnp.concatenate([h[0], h[1], c[0], c[1]], axis=1)


def unpack_state(state_packed):
    H = HIDDEN
    h = jnp.stack([state_packed[:, :H], state_packed[:, H:2 * H]])
    c = jnp.stack([state_packed[:, 2 * H:3 * H], state_packed[:, 3 * H:4 * H]])
    return h, c


# ------------------------------- per-step path --------------------------------
# TODO(synk): for full greedy decoding, fold the step loop into one pallas_call
# (step grid axis marked 'arbitrary', state carried in VMEM scratch, in-kernel
# argmax feeding the next one-hot) so the packed weights stay VMEM-resident
# across all steps; the next-token index is data-dependent so the gather must
# remain in-kernel anyway.
@jax.jit
def decode_step(target_ids, state_packed, packed):
    """One fused decode step; returns (logits, next_state_packed, probs)."""
    w0, w1, b01, wh, bh, enc_t, enc_f = packed
    vmem = pl.BlockSpec(memory_space=pltpu.MemorySpace.VMEM)
    out = pl.pallas_call(
        decoder_step_kernel,
        out_shape=jax.ShapeDtypeStruct((BATCH, 6 * HIDDEN), jnp.float32),
        in_specs=[vmem] * 9,
        out_specs=vmem,
    )(target_ids.astype(jnp.int32).reshape(BATCH, 1), state_packed,
      w0, w1, b01, wh, bh, enc_t, enc_f)
    state_next = out[:, :4 * HIDDEN]
    logits = out[:, 4 * HIDDEN:4 * HIDDEN + LABELS]
    probs = out[:, 5 * HIDDEN:5 * HIDDEN + LABELS]
    return logits, state_next, probs


def positive_labels_decoder(target_sequences, last_state, encoder_outputs, params):
    """Drop-in equivalent of the PyTorch forward: returns (logits, (h_n, c_n), softmax_dim1).

    For real decoding loops, call pack_decoder()/pack_state() once and reuse
    decode_step() per step (everything here except the pallas_call is hoistable).
    """
    packed = pack_decoder(params, encoder_outputs)
    logits, state_next, probs = decode_step(
        target_sequences, pack_state(*last_state), packed)
    hn, cn = unpack_state(state_next)
    return logits, (hn, cn), probs


# ----------------------------- pure-JAX reference -----------------------------
def reference(target_sequences, last_state, encoder_outputs, params):
    H = HIDDEN
    h, c = last_state
    x = params["embedding"][target_sequences]

    def cell(x, h, c, w_ih, w_hh, b):
        g = x @ w_ih + h @ w_hh + b
        i = jax.nn.sigmoid(g[:, :H]); f = jax.nn.sigmoid(g[:, H:2 * H])
        gg = jnp.tanh(g[:, 2 * H:3 * H]); o = jax.nn.sigmoid(g[:, 3 * H:])
        c_new = f * c + i * gg
        return o * jnp.tanh(c_new), c_new

    h0n, c0n = cell(x, h[0], c[0], params["wih0"], params["whh0"], params["b0"])
    h1n, c1n = cell(h0n, h[1], c[1], params["wih1"], params["whh1"], params["b1"])
    energy = jnp.sum(encoder_outputs * h1n[None], axis=2)      # (S, B)
    attn = jax.nn.softmax(energy, axis=0)
    context = jnp.sum(attn[:, :, None] * encoder_outputs, axis=0)
    concat = jnp.concatenate([h1n, context], axis=1)
    co = jnp.tanh(concat @ params["wc"] + params["bc"])
    logits = co @ params["wo"] + params["bo"]
    probs = jax.nn.softmax(logits, axis=1)
    return logits, (jnp.stack([h0n, h1n]), jnp.stack([c0n, c1n])), probs


# ---------------------------------- main --------------------------------------
if __name__ == "__main__":
    key = jax.random.PRNGKey(0)
    ks = jax.random.split(key, 20)
    f32 = jnp.float32

    # Deterministic synthetic parameters (PyTorch shapes, pre-transposed for dot):
    #  LSTM layer l: weight_ih_l (4H, in) -> stored as (in, 4H); bias = b_ih + b_hh -> (1, 4H)
    #  Linear_concat: (H, 2H) -> stored as (2H, H); Linear_out: (L, H) -> (H, L)
    params = {
        "embedding": 0.1 * jax.random.normal(ks[0], (LABELS, HIDDEN), f32),
        "wih0": 0.1 * jax.random.normal(ks[1], (HIDDEN, 4 * HIDDEN), f32),
        "whh0": 0.1 * jax.random.normal(ks[2], (HIDDEN, 4 * HIDDEN), f32),
        "b0":   0.1 * jax.random.normal(ks[3], (1, 4 * HIDDEN), f32),
        "wih1": 0.1 * jax.random.normal(ks[4], (HIDDEN, 4 * HIDDEN), f32),
        "whh1": 0.1 * jax.random.normal(ks[5], (HIDDEN, 4 * HIDDEN), f32),
        "b1":   0.1 * jax.random.normal(ks[6], (1, 4 * HIDDEN), f32),
        "wc":   0.1 * jax.random.normal(ks[7], (2 * HIDDEN, HIDDEN), f32),
        "bc":   0.1 * jax.random.normal(ks[8], (1, HIDDEN), f32),
        "wo":   0.1 * jax.random.normal(ks[9], (HIDDEN, LABELS), f32),
        "bo":   0.1 * jax.random.normal(ks[10], (1, LABELS), f32),
    }

    # Inputs
    target_sequences = jax.random.randint(ks[11], (BATCH,), 0, LABELS)
    h0 = 0.1 * jax.random.normal(ks[12], (LAYERS, BATCH, HIDDEN), f32)
    c0 = 0.1 * jax.random.normal(ks[13], (LAYERS, BATCH, HIDDEN), f32)
    encoder_outputs = jax.random.normal(ks[14], (SEQ, BATCH, HIDDEN), f32)

    # ---- hoisted per-session packing (the recommended fast path) ----
    packed = pack_decoder(params, encoder_outputs)
    state = pack_state(h0, c0)

    # Step 1 through the module-style wrapper (API-equivalent forward)
    logits1, (hn1, cn1), probs1 = positive_labels_decoder(
        target_sequences, (h0, c0), encoder_outputs, params)

    # Step 1 + chained step 2 through the hoisted fast path (zero-glue chaining)
    _, state, _ = decode_step(target_sequences, state, packed)
    tok2 = (target_sequences + 3) % LABELS
    logits2, state, probs2 = decode_step(tok2, state, packed)
    hn2, cn2 = unpack_state(state)
    jax.block_until_ready((logits1, probs1, hn1, cn1, logits2, probs2, hn2, cn2))

    # Pure-JAX reference, step by step
    r_logits1, r_state1, r_probs1 = reference(target_sequences, (h0, c0),
                                              encoder_outputs, params)
    r_logits2, r_state2, r_probs2 = reference(tok2, r_state1,
                                              encoder_outputs, params)

    import numpy as np
    np.testing.assert_allclose(np.asarray(logits1), np.asarray(r_logits1), rtol=1e-5, atol=1e-5)
    np.testing.assert_allclose(np.asarray(probs1),  np.asarray(r_probs1),  rtol=1e-5, atol=1e-5)
    np.testing.assert_allclose(np.asarray(hn1),     np.asarray(r_state1[0]), rtol=1e-5, atol=1e-5)
    np.testing.assert_allclose(np.asarray(cn1),     np.asarray(r_state1[1]), rtol=1e-5, atol=1e-5)
    np.testing.assert_allclose(np.asarray(logits2), np.asarray(r_logits2), rtol=1e-5, atol=1e-5)
    np.testing.assert_allclose(np.asarray(probs2),  np.asarray(r_probs2),  rtol=1e-5, atol=1e-5)
    np.testing.assert_allclose(np.asarray(hn2),     np.asarray(r_state2[0]), rtol=1e-5, atol=1e-5)
    np.testing.assert_allclose(np.asarray(cn2),     np.asarray(r_state2[1]), rtol=1e-5, atol=1e-5)

    print("KERNEL_OK")
</pallas_src>

<mosaic_0001>
module attributes {stable_mosaic.version = 11 : i64} {
  func.func @decoder_step_kernel(%arg0: memref<2x1xi32, #tpu.memory_space<vmem>>, %arg1: memref<2x128xf32, #tpu.memory_space<vmem>>, %arg2: memref<48x128xf32, #tpu.memory_space<vmem>>, %arg3: memref<64x128xf32, #tpu.memory_space<vmem>>, %arg4: memref<2x128xf32, #tpu.memory_space<vmem>>, %arg5: memref<96x32xf32, #tpu.memory_space<vmem>>, %arg6: memref<2x32xf32, #tpu.memory_space<vmem>>, %arg7: memref<32x16xf32, #tpu.memory_space<vmem>>, %arg8: memref<16x32xf32, #tpu.memory_space<vmem>>, %arg9: memref<2x192xf32, #tpu.memory_space<vmem>>) attributes {dimension_semantics = [], scalar_prefetch = 0 : i64, scratch_operands = 0 : i64, tpu.core_type = #tpu.core_type<tc>} {
    %c0 = arith.constant 0 : index
    %c0_0 = arith.constant 0 : index
    %0 = vector.load %arg1[%c0, %c0_0] : memref<2x128xf32, #tpu.memory_space<vmem>>, vector<2x128xf32>
    %1 = vector.extract_strided_slice %0 {offsets = [0, 0], sizes = [2, 32], strides = [1, 1]} : vector<2x128xf32> to vector<2x32xf32>
    %2 = vector.extract_strided_slice %0 {offsets = [0, 32], sizes = [2, 32], strides = [1, 1]} : vector<2x128xf32> to vector<2x32xf32>
    %3 = vector.extract_strided_slice %0 {offsets = [0, 64], sizes = [2, 32], strides = [1, 1]} : vector<2x128xf32> to vector<2x32xf32>
    %4 = vector.extract_strided_slice %0 {offsets = [0, 96], sizes = [2, 32], strides = [1, 1]} : vector<2x128xf32> to vector<2x32xf32>
    %5 = tpu.iota {dimensions = array<i32: 1>} : vector<2x16xi32>
    %c0_1 = arith.constant 0 : index
    %c0_2 = arith.constant 0 : index
    %6 = vector.load %arg0[%c0_1, %c0_2] : memref<2x1xi32, #tpu.memory_space<vmem>>, vector<2x1xi32>
    %7 = vector.broadcast %6 : vector<2x1xi32> to vector<2x16xi32>
    %8 = arith.cmpi eq, %5, %7 : vector<2x16xi32>
    %9 = arith.extui %8 : vector<2x16xi1> to vector<2x16xi32>
    %10 = arith.sitofp %9 : vector<2x16xi32> to vector<2x16xf32>
    %11 = tpu.concatenate %10, %1 in 1 : vector<2x16xf32>, vector<2x32xf32> -> vector<2x48xf32>
    %c0_3 = arith.constant 0 : index
    %c0_4 = arith.constant 0 : index
    %12 = vector.load %arg2[%c0_3, %c0_4] : memref<48x128xf32, #tpu.memory_space<vmem>>, vector<48x128xf32>
    %cst = arith.constant dense<0.000000e+00> : vector<2x128xf32>
    %13 = tpu.matmul %11, %12, %cst {dimension_numbers = #tpu.dot_dimension_numbers<[1], [0], [0], [1], [0, 0, 1, 1], [], []>} : vector<2x48xf32>, vector<48x128xf32>, vector<2x128xf32> -> vector<2x128xf32>
    %c0_5 = arith.constant 0 : index
    %c0_6 = arith.constant 0 : index
    %14 = vector.load %arg4[%c0_5, %c0_6] : memref<2x128xf32, #tpu.memory_space<vmem>>, vector<1x128xf32>
    %15 = vector.broadcast %14 : vector<1x128xf32> to vector<2x128xf32>
    %16 = arith.addf %13, %15 : vector<2x128xf32>
    %17 = arith.negf %16 : vector<2x128xf32>
    %18 = math.exp %17 : vector<2x128xf32>
    %cst_7 = arith.constant 1.000000e+00 : f32
    %19 = vector.broadcast %cst_7 : f32 to vector<2x128xf32>
    %20 = arith.addf %19, %18 : vector<2x128xf32>
    %21 = arith.divf %19, %20 : vector<2x128xf32>
    %22 = math.tanh %16 : vector<2x128xf32>
    %23 = vector.extract_strided_slice %21 {offsets = [0, 0], sizes = [2, 32], strides = [1, 1]} : vector<2x128xf32> to vector<2x32xf32>
    %24 = vector.extract_strided_slice %21 {offsets = [0, 32], sizes = [2, 32], strides = [1, 1]} : vector<2x128xf32> to vector<2x32xf32>
    %25 = vector.extract_strided_slice %22 {offsets = [0, 64], sizes = [2, 32], strides = [1, 1]} : vector<2x128xf32> to vector<2x32xf32>
    %26 = vector.extract_strided_slice %21 {offsets = [0, 96], sizes = [2, 32], strides = [1, 1]} : vector<2x128xf32> to vector<2x32xf32>
    %27 = arith.mulf %24, %3 : vector<2x32xf32>
    %28 = arith.mulf %23, %25 : vector<2x32xf32>
    %29 = arith.addf %27, %28 : vector<2x32xf32>
    %30 = math.tanh %29 : vector<2x32xf32>
    %31 = arith.mulf %26, %30 : vector<2x32xf32>
    %32 = tpu.concatenate %31, %2 in 1 : vector<2x32xf32>, vector<2x32xf32> -> vector<2x64xf32>
    %c0_8 = arith.constant 0 : index
    %c0_9 = arith.constant 0 : index
    %33 = vector.load %arg3[%c0_8, %c0_9] : memref<64x128xf32, #tpu.memory_space<vmem>>, vector<64x128xf32>
    %cst_10 = arith.constant dense<0.000000e+00> : vector<2x128xf32>
    %34 = tpu.matmul %32, %33, %cst_10 {dimension_numbers = #tpu.dot_dimension_numbers<[1], [0], [0], [1], [0, 0, 1, 1], [], []>} : vector<2x64xf32>, vector<64x128xf32>, vector<2x128xf32> -> vector<2x128xf32>
    %c1 = arith.constant 1 : index
    %c0_11 = arith.constant 0 : index
    %35 = vector.load %arg4[%c1, %c0_11] : memref<2x128xf32, #tpu.memory_space<vmem>>, vector<1x128xf32>
    %36 = vector.broadcast %35 : vector<1x128xf32> to vector<2x128xf32>
    %37 = arith.addf %34, %36 : vector<2x128xf32>
    %38 = arith.negf %37 : vector<2x128xf32>
    %39 = math.exp %38 : vector<2x128xf32>
    %cst_12 = arith.constant 1.000000e+00 : f32
    %40 = vector.broadcast %cst_12 : f32 to vector<2x128xf32>
    %41 = arith.addf %40, %39 : vector<2x128xf32>
    %42 = arith.divf %40, %41 : vector<2x128xf32>
    %43 = math.tanh %37 : vector<2x128xf32>
    %44 = vector.extract_strided_slice %42 {offsets = [0, 0], sizes = [2, 32], strides = [1, 1]} : vector<2x128xf32> to vector<2x32xf32>
    %45 = vector.extract_strided_slice %42 {offsets = [0, 32], sizes = [2, 32], strides = [1, 1]} : vector<2x128xf32> to vector<2x32xf32>
    %46 = vector.extract_strided_slice %43 {offsets = [0, 64], sizes = [2, 32], strides = [1, 1]} : vector<2x128xf32> to vector<2x32xf32>
    %47 = vector.extract_strided_slice %42 {offsets = [0, 96], sizes = [2, 32], strides = [1, 1]} : vector<2x128xf32> to vector<2x32xf32>
    %48 = arith.mulf %45, %4 : vector<2x32xf32>
    %49 = arith.mulf %44, %46 : vector<2x32xf32>
    %50 = arith.addf %48, %49 : vector<2x32xf32>
    %51 = math.tanh %50 : vector<2x32xf32>
    %52 = arith.mulf %47, %51 : vector<2x32xf32>
    %c0_13 = arith.constant 0 : index
    %c0_14 = arith.constant 0 : index
    %53 = vector.load %arg7[%c0_13, %c0_14] : memref<32x16xf32, #tpu.memory_space<vmem>>, vector<32x16xf32>
    %cst_15 = arith.constant dense<0.000000e+00> : vector<2x16xf32>
    %54 = tpu.matmul %52, %53, %cst_15 {dimension_numbers = #tpu.dot_dimension_numbers<[1], [0], [0], [1], [0, 0, 1, 1], [], []>} : vector<2x32xf32>, vector<32x16xf32>, vector<2x16xf32> -> vector<2x16xf32>
    %55 = tpu.iota {dimensions = array<i32: 0>} : vector<2x16xi32>
    %56 = tpu.iota {dimensions = array<i32: 1>} : vector<2x16xi32>
    %c8_i32 = arith.constant 8 : i32
    %57 = vector.broadcast %c8_i32 : i32 to vector<2x16xi32>
    %58 = arith.muli %55, %57 : vector<2x16xi32>
    %59 = arith.cmpi sge, %56, %58 : vector<2x16xi32>
    %c8_i32_16 = arith.constant 8 : i32
    %60 = vector.broadcast %c8_i32_16 : i32 to vector<2x16xi32>
    %61 = arith.muli %55, %60 : vector<2x16xi32>
    %c8_i32_17 = arith.constant 8 : i32
    %62 = vector.broadcast %c8_i32_17 : i32 to vector<2x16xi32>
    %63 = arith.addi %61, %62 : vector<2x16xi32>
    %64 = arith.cmpi slt, %56, %63 : vector<2x16xi32>
    %65 = arith.andi %59, %64 : vector<2x16xi1>
    %cst_18 = arith.constant -1.000000e+30 : f32
    %66 = vector.broadcast %cst_18 : f32 to vector<2x16xf32>
    %67 = arith.select %65, %54, %66 : vector<2x16xi1>, vector<2x16xf32>
    %cst_19 = arith.constant dense<0xFF800000> : vector<2xf32>
    %68 = vector.multi_reduction <maximumf>, %67, %cst_19 [1] : vector<2x16xf32> to vector<2xf32>
    %69 = vector.shape_cast %68 : vector<2xf32> to vector<2x1xf32>
    %70 = vector.broadcast %69 : vector<2x1xf32> to vector<2x16xf32>
    %71 = arith.subf %67, %70 : vector<2x16xf32>
    %72 = math.exp %71 : vector<2x16xf32>
    %cst_20 = arith.constant dense<0.000000e+00> : vector<2xf32>
    %73 = vector.multi_reduction <add>, %72, %cst_20 [1] : vector<2x16xf32> to vector<2xf32>
    %74 = vector.shape_cast %73 : vector<2xf32> to vector<2x1xf32>
    %75 = vector.broadcast %74 : vector<2x1xf32> to vector<2x16xf32>
    %76 = arith.divf %72, %75 : vector<2x16xf32>
    %c0_21 = arith.constant 0 : index
    %c0_22 = arith.constant 0 : index
    %77 = vector.load %arg8[%c0_21, %c0_22] : memref<16x32xf32, #tpu.memory_space<vmem>>, vector<16x32xf32>
    %cst_23 = arith.constant dense<0.000000e+00> : vector<2x32xf32>
    %78 = tpu.matmul %76, %77, %cst_23 {dimension_numbers = #tpu.dot_dimension_numbers<[1], [0], [0], [1], [0, 0, 1, 1], [], []>} : vector<2x16xf32>, vector<16x32xf32>, vector<2x32xf32> -> vector<2x32xf32>
    %79 = tpu.concatenate %52, %78 in 1 : vector<2x32xf32>, vector<2x32xf32> -> vector<2x64xf32>
    %c0_24 = arith.constant 0 : index
    %c0_25 = arith.constant 0 : index
    %80 = vector.load %arg5[%c0_24, %c0_25] : memref<96x32xf32, #tpu.memory_space<vmem>>, vector<64x32xf32>
    %cst_26 = arith.constant dense<0.000000e+00> : vector<2x32xf32>
    %81 = tpu.matmul %79, %80, %cst_26 {dimension_numbers = #tpu.dot_dimension_numbers<[1], [0], [0], [1], [0, 0, 1, 1], [], []>} : vector<2x64xf32>, vector<64x32xf32>, vector<2x32xf32> -> vector<2x32xf32>
    %c0_27 = arith.constant 0 : index
    %c0_28 = arith.constant 0 : index
    %82 = vector.load %arg6[%c0_27, %c0_28] : memref<2x32xf32, #tpu.memory_space<vmem>>, vector<1x32xf32>
    %83 = vector.broadcast %82 : vector<1x32xf32> to vector<2x32xf32>
    %84 = arith.addf %81, %83 : vector<2x32xf32>
    %85 = math.tanh %84 : vector<2x32xf32>
    %c64 = arith.constant 64 : index
    %c0_29 = arith.constant 0 : index
    %86 = vector.load %arg5[%c64, %c0_29] : memref<96x32xf32, #tpu.memory_space<vmem>>, vector<32x32xf32>
    %cst_30 = arith.constant dense<0.000000e+00> : vector<2x32xf32>
    %87 = tpu.matmul %85, %86, %cst_30 {dimension_numbers = #tpu.dot_dimension_numbers<[1], [0], [0], [1], [0, 0, 1, 1], [], []>} : vector<2x32xf32>, vector<32x32xf32>, vector<2x32xf32> -> vector<2x32xf32>
    %c1_31 = arith.constant 1 : index
    %c0_32 = arith.constant 0 : index
    %88 = vector.load %arg6[%c1_31, %c0_32] : memref<2x32xf32, #tpu.memory_space<vmem>>, vector<1x32xf32>
    %89 = vector.broadcast %88 : vector<1x32xf32> to vector<2x32xf32>
    %90 = arith.addf %87, %89 : vector<2x32xf32>
    %cst_33 = arith.constant dense<0xFF800000> : vector<2xf32>
    %91 = vector.multi_reduction <maximumf>, %90, %cst_33 [1] : vector<2x32xf32> to vector<2xf32>
    %92 = vector.shape_cast %91 : vector<2xf32> to vector<2x1xf32>
    %93 = vector.broadcast %92 : vector<2x1xf32> to vector<2x32xf32>
    %94 = arith.subf %90, %93 : vector<2x32xf32>
    %95 = math.exp %94 : vector<2x32xf32>
    %cst_34 = arith.constant dense<0.000000e+00> : vector<2xf32>
    %96 = vector.multi_reduction <add>, %95, %cst_34 [1] : vector<2x32xf32> to vector<2xf32>
    %97 = vector.shape_cast %96 : vector<2xf32> to vector<2x1xf32>
    %98 = vector.broadcast %97 : vector<2x1xf32> to vector<2x32xf32>
    %99 = arith.divf %95, %98 : vector<2x32xf32>
    %100 = tpu.concatenate %31, %52, %29, %50, %90, %99 in 1 : vector<2x32xf32>, vector<2x32xf32>, vector<2x32xf32>, vector<2x32xf32>, vector<2x32xf32>, vector<2x32xf32> -> vector<2x192xf32>
    %c0_35 = arith.constant 0 : index
    %c0_36 = arith.constant 0 : index
    %101 = vector.load %arg9[%c0_35, %c0_36] : memref<2x192xf32, #tpu.memory_space<vmem>>, vector<2x192xf32>
    tpu.vector_store %arg9[%c0_35, %c0_36], %100 {strides = array<i32>} : memref<2x192xf32, #tpu.memory_space<vmem>>, vector<2x192xf32>,
    return
  }
}

</mosaic_0001>

<bundles_post_ra>
// kernel: decode_step.1
= control target key start
LH: loop header
LB: loop body
LE: loop exit
PB: predicated region body
PF: predicated region fallthrough
CT: control target
= control target key end

     0   :  { %v848_v0 = vmov 0   ;;  %v849_v2 = vmov 0.0   ;;  %vm850_vm0 = vmmov 0   ;;  %v33_v10 = vlaneseq  ;;  %s852_s25 = smov 64   ;;  %s853_s26 = smov 96   ;;  %s1130_s0 = inlined_call_operand.vmem [shape: s32[2,1], index: 0, kind: input, shape index: {}]   ;;  %s1131_s1 = inlined_call_operand.vmem [shape: f32[2,128], index: 1, kind: input, shape index: {}]   ;;  %s1132_s2 = inlined_call_operand.vmem [shape: f32[48,128], index: 2, kind: input, shape index: {}]   ;;  %s1133_s4 = inlined_call_operand.vmem [shape: f32[2,128], index: 4, kind: input, shape index: {}]   ;;  %s1134_s3 = inlined_call_operand.vmem [shape: f32[64,128], index: 3, kind: input, shape index: {}]   ;;  %s1135_s7 = inlined_call_operand.vmem [shape: f32[32,16], index: 7, kind: input, shape index: {}]   ;;  %s1136_s8 = inlined_call_operand.vmem [shape: f32[16,32], index: 8, kind: input, shape index: {}]   ;;  %s1137_s5 = inlined_call_operand.vmem [shape: f32[96,32], index: 5, kind: input, shape index: {}]   ;;  %s1138_s6 = inlined_call_operand.vmem [shape: f32[2,32], index: 6, kind: input, shape index: {}]   ;;  %s1139_s9 = inlined_call_operand.vmem [shape: f32[2,192], index: 9, kind: output, shape index: {}]  }
   0x1   :  { %821 = vset.pattern.permute.xlu0 %v848_v0  ;;  %v35_v1 = vld [vmem:[%s1130_s0] sm:$0x3]  ;;  %731 = vmatprep.subr.mxu0 %v849_v2  ;;  %v53_v3 = vld [vmem:[%s1132_s2 + $0x28] sm:$0xff]  ;;  %v51_v6 = vld [vmem:[%s1132_s2 + $0x18] sm:$0xff]  ;;  %vm46_vm2 = vcmask 130048   ;;  %vm59_vm3 = vcmask 392192  }
   0x2   :  { %37 = vperm.xlu0 %821, %v35_v1   ;;  %732 = vmatpush3.msra.mxu0 %v53_v3  ;;  %v52_v4 = vld [vmem:[%s1132_s2 + $0x20] sm:$0xff]  ;;  %v50_v7 = vld [vmem:[%s1132_s2 + $0x10] sm:$0xff]  ;;  %v49_v8 = vld [vmem:[%s1132_s2 + $0x8] sm:$0xff]  ;;  %v946_v11 = vand.u32 127, %v33_v10  ;;  %s854_s27 = smov 32   ;;  %vm164_vm4 = vcmask 261120  }
   0x3   :  { %v919_v5 = vld [vmem:[%s1131_s1] sm:$0x3]  ;;  %733 = vmatprep.subr.mxu0 %v849_v2  ;;  %743 = vmatprep.mubr.msk.f32.mxu0 %vm850_vm0, %v849_v2  ;;  %s851_s1 = smov 16   ;;  %v173_v31 = vld [vmem:[%s1134_s3 + $0x38] sm:$0xff]  ;;  %v172_v32 = vld [vmem:[%s1134_s3 + $0x30] sm:$0xff]  ;;  %vm179_vm5 = vcmask 523264  }
   0x4   :  { %734 = vmatpush3.msra.mxu0 %v52_v4  ;;  %746 = vmatprep.subr.mxu1 %v849_v2  ;;  %v48_v9 = vld [vmem:[%s1132_s2] sm:$0xff]  ;;  %v171_v33 = vld [vmem:[%s1134_s3 + $0x28] sm:$0xff]  ;;  %v169_v35 = vld [vmem:[%s1134_s3 + $0x18] sm:$0xff]  ;;  %v1042_v4 = vshrl.u32 %v33_v10, 7  ;;  %vm367_vm9 = vcmask 123904   ;;  %vm629_vm10 = vcmask 254976  }
   0x5   :  { %735 = vmatprep.subr.mxu0 %v849_v2  ;;  %762 = vmatprep.mubr.msk.f32.mxu1 %vm850_vm0, %v849_v2  ;;  %v681_v16 = vld [vmem:[%s1133_s4] ss:$0 sm:$0xff]  ;;  %v168_v36 = vld [vmem:[%s1134_s3 + $0x10] sm:$0xff]  ;;  %v167_v38 = vld [vmem:[%s1134_s3 + $0x8] sm:$0xff]  ;;  %vm658_vm11 = vcmask 785408   ;;  %vm672_vm12 = vcmask 1041408  }
   0x6   :  { %43 = vrot.lane.b32.xlu0 %v919_v5, %s851_s1  ;;  %736 = vmatpush3.msra.mxu0 %v51_v6  ;;  %v170_v34 = vld [vmem:[%s1134_s3 + $0x20] sm:$0xff]  ;;  %v283_v59 = vld [vmem:[%s1135_s7 + $0x18] sm:$0xff]  ;;  %v282_v60 = vld [vmem:[%s1135_s7 + $0x10] sm:$0xff]  ;;  %vm673_vm13 = vcmask 519170  }
   0x7   :  { %737 = vmatprep.subr.mxu0 %v849_v2  ;;  %747 = vmatpush3.msra.mxu1 %v173_v31  ;;  %v166_v39 = vld [vmem:[%s1134_s3] sm:$0xff]  ;;  %v281_v61 = vld [vmem:[%s1135_s7 + $0x8] sm:$0xff]  ;;  %vm674_vm14 = vmor %vm673_vm13, %vm672_vm12 }
   0x8   :  { %738 = vmatpush3.msra.mxu0 %v50_v7  ;;  %748 = vmatprep.subr.mxu1 %v849_v2  ;;  %v684_v44 = vld [vmem:[%s1133_s4 + $0x1] ss:$0 sm:$0xff] }
   0x9   :  { %739 = vmatprep.subr.mxu0 %v849_v2  ;;  %749 = vmatpush3.msra.mxu1 %v172_v32  ;;  %v280_v62 = vld [vmem:[%s1135_s7] sm:$0xff] }
   0xa   :  { %740 = vmatpush3.msra.mxu0 %v49_v8  ;;  %750 = vmatprep.subr.mxu1 %v849_v2 }
   0xb   :  { %741 = vmatprep.subr.mxu0 %v849_v2  ;;  %751 = vmatpush3.msra.mxu1 %v171_v33 }
   0xc   :  { %742 = vmatpush3.msra.mxu0 %v48_v9  ;;  %752 = vmatprep.subr.mxu1 %v849_v2 }
   0xd   :  { %765 = vmatprep.subr.mxu0 %v849_v2  ;;  %753 = vmatpush3.msra.mxu1 %v170_v34  ;;  %v550_v34 = vld [vmem:[%s1137_s5 + $0x58] sm:$0xff] }
   0xe   :  { %754 = vmatprep.subr.mxu1 %v849_v2 }
   0xf   :  { %755 = vmatpush3.msra.mxu1 %v169_v35  ;;  %v549_v35 = vld [vmem:[%s1137_s5 + $0x50] sm:$0xff] }
  0x10   :  { %756 = vmatprep.subr.mxu1 %v849_v2 }
  0x11   :  { %757 = vmatpush3.msra.mxu1 %v168_v36  ;;  %v547_v36 = vld [vmem:[%s1137_s5 + $0x40] sm:$0xff] }
  0x12   :  { %758 = vmatprep.subr.mxu1 %v849_v2 }
  0x13   :  { %759 = vmatpush3.msra.mxu1 %v167_v38 }
  0x14   :  { %760 = vmatprep.subr.mxu1 %v849_v2 }
  0x15   :  { %761 = vmatpush3.msra.mxu1 %v166_v39 }
  0x16   :  { %776 = vmatprep.subr.mxu1 %v849_v2 }
  0x7d   :  { %v38_v12 = vpop.permute.xlu0 %37 }
  0x7e   :  { %vm39_vm1 = vcmp.eq.s32.totalorder %v946_v11, %v38_v12 }
  0x7f   :  { %v680_v13 = vsel %vm39_vm1, 1.0, %v849_v2 }
  0x81   :  { %v44_v14 = vpop.permute.xlu0 %43 }
  0x82   :  { %v47_v15 = vsel %vm46_vm2, %v680_v13, %v44_v14 }
  0x83   :  { %744 = vmatmul.mubr.msk.f32.vlgmr.msra.gmra.mxu0 %vm59_vm3, %v47_v15 }
  0x84   :  { %773 = vmatprep.mubr.msk.f32.mxu0 %vm850_vm0, %v849_v2  ;;  %766 = vmatpush3.msra.mxu0 %v283_v59 }
  0x85   :  { %767 = vmatprep.subr.mxu0 %v849_v2 }
  0x86   :  { %768 = vmatpush3.msra.mxu0 %v282_v60 }
  0x87   :  { %769 = vmatprep.subr.mxu0 %v849_v2 }
  0x88   :  { %770 = vmatpush3.msra.mxu0 %v281_v61 }
  0x89   :  { %771 = vmatprep.subr.mxu0 %v849_v2 }
  0x8a   :  { %772 = vmatpush3.msra.mxu0 %v280_v62 }
  0x8b   :  { %783 = vmatprep.subr.mxu0 %v849_v2 }
 0x143   :  { %v129_v17 = vpop.f32.mrf.mxu0 }
 0x144   :  { %v130_v18 = vadd.f32 %v681_v16, %v129_v17  ;;  %v380_v17 = vld [vmem:[%s1136_s8 + $0x8] sm:$0xff] }
 0x145   :  { %v745_v19 = vpop.f32.mrf.mxu0 }
 0x146   :  { %822 = vtanh.f32 %v130_v18  ;;  %v683_v21 = vmul.f32 -1.442695, %v130_v18 }
 0x148   :  { %824 = vpow2.f32 %v683_v21  ;;  %v467_v21 = vld [vmem:[%s1137_s5 + $0x38] sm:$0xff] }
 0x153   :  { %v823_v20 = vpop.eup %822 }
 0x154   :  { %145 = vrot.lane.b32.xlu1 %v823_v20, %s852_s25 }
 0x155   :  { %v825_v22 = vpop.eup %824 }
 0x156   :  { %v136_v23 = vadd.f32 1.0, %v825_v22  ;;  %v466_v22 = vld [vmem:[%s1137_s5 + $0x30] sm:$0xff] }
 0x158   :  { %140 = vrot.lane.b32.xlu1 %v919_v5, %s853_s26  ;;  %826 = vrcp.f32 %v136_v23  ;;  %v465_v23 = vld [vmem:[%s1137_s5 + $0x28] sm:$0xff] }
 0x165   :  { %v827_v24 = vpop.eup %826 }
 0x1c6   :  { %v146_v25 = vpop.permute.xlu1 %145 }
 0x1c7   :  { %v148_v26 = vmul.f32 %v827_v24, %v146_v25  ;;  %v463_v25 = vld [vmem:[%s1137_s5 + $0x18] sm:$0xff] }
 0x1c9   :  { %150 = vrot.lane.b32.xlu0 %v148_v26, %s854_s27  ;;  %v462_v26 = vld [vmem:[%s1137_s5 + $0x10] sm:$0xff] }
 0x1ca   :  { %v141_v27 = vpop.permute.xlu1 %140 }
 0x1cb   :  { %v143_v28 = vmul.f32 %v827_v24, %v141_v27  ;;  %v461_v27 = vld [vmem:[%s1137_s5 + $0x8] sm:$0xff] }
 0x23b   :  { %v151_v29 = vpop.permute.xlu0 %150 }
 0x23c   :  { %v959_v30 = vadd.f32 %v151_v29, %v143_v28  ;;  %v460_v28 = vld [vmem:[%s1137_s5] sm:$0xff] }
 0x23e   :  { %828 = vtanh.f32 %v959_v30 }
 0x24b   :  { %v829_v37 = vpop.eup %828 }
 0x24c   :  { %156 = vrot.lane.b32.xlu1 %v829_v37, %s852_s25  ;;  %v689_v37 = vld [vmem:[%s1138_s6] ss:$0 sm:$0xff] }
 0x2be   :  { %v157_v40 = vpop.permute.xlu1 %156 }
 0x2bf   :  { %v159_v41 = vmul.f32 %v827_v24, %v157_v40  ;;  %v464_v24 = vld [vmem:[%s1137_s5 + $0x20] sm:$0xff] }
 0x2c1   :  { %161 = vrot.lane.b32.xlu0 %v159_v41, %s854_s27 }
 0x2c5   :  { %260 = vrot.lane.b32.xlu0 %v919_v5, %s852_s25 }
 0x333   :  { %v998_v42 = vpop.permute.xlu0 %161 }
 0x334   :  { %v165_v43 = vsel %vm164_vm4, %v998_v42, %v919_v5  ;;  %v361_v5 = vmul.u32 8, %v1042_v4 }
 0x335   :  { %763 = vmatmul.mubr.msk.f32.vlgmr.msra.gmra.mxu1 %vm179_vm5, %v165_v43  ;;  %v691_v43 = vld [vmem:[%s1138_s6 + $0x1] ss:$0 sm:$0xff] }
 0x336   :  { %780 = vmatprep.mubr.msk.f32.mxu1 %vm850_vm0, %v849_v2  ;;  %v363_v6 = vadd.s32 8, %v361_v5  ;;  %vm362_vm6 = vcmp.ge.s32.totalorder %v946_v11, %v361_v5  ;;  %777 = vmatpush3.msra.mxu1 %v380_v17 }
 0x337   :  { %v261_v55 = vpop.permute.xlu0 %260  ;;  %778 = vmatprep.subr.mxu1 %v849_v2 }
 0x338   :  { %vm364_vm7 = vcmp.lt.s32.totalorder %v946_v11, %v363_v6  ;;  %v379_v11 = vld [vmem:[%s1136_s8] sm:$0xff] }
 0x339   :  { %vm365_vm8 = vmand %vm362_vm6, %vm364_vm7  ;;  %779 = vmatpush3.msra.mxu1 %v379_v11 }
 0x33a   :  { %802 = vmatprep.subr.mxu1 %v849_v2 }
 0x3f5   :  { %v249_v45 = vpop.f32.mrf.mxu1 }
 0x3f6   :  { %v250_v46 = vadd.f32 %v684_v44, %v249_v45 }
 0x3f7   :  { %v764_v47 = vpop.f32.mrf.mxu1 }
 0x3f8   :  { %830 = vtanh.f32 %v250_v46  ;;  %v686_v49 = vmul.f32 -1.442695, %v250_v46 }
 0x3fa   :  { %832 = vpow2.f32 %v686_v49 }
 0x405   :  { %v831_v48 = vpop.eup %830 }
 0x406   :  { %265 = vrot.lane.b32.xlu1 %v831_v48, %s852_s25 }
 0x407   :  { %v833_v50 = vpop.eup %832 }
 0x408   :  { %v256_v51 = vadd.f32 1.0, %v833_v50 }
 0x40a   :  { %834 = vrcp.f32 %v256_v51 }
 0x417   :  { %v835_v52 = vpop.eup %834 }
 0x418   :  { %v263_v56 = vmul.f32 %v835_v52, %v261_v55 }
 0x478   :  { %v266_v53 = vpop.permute.xlu1 %265 }
 0x479   :  { %v268_v54 = vmul.f32 %v835_v52, %v266_v53 }
 0x47b   :  { %270 = vrot.lane.b32.xlu1 %v268_v54, %s854_s27 }
 0x4ed   :  { %v271_v57 = vpop.permute.xlu1 %270 }
 0x4ee   :  { %v1011_v58 = vadd.f32 %v271_v57, %v263_v56  ;;  %v855_v57 = vmov 1983009808  }
 0x4f0   :  { %836 = vtanh.f32 %v1011_v58 }
 0x4fd   :  { %v837_v63 = vpop.eup %836 }
 0x4fe   :  { %276 = vrot.lane.b32.xlu0 %v837_v63, %s852_s25 }
 0x570   :  { %v277_v0 = vpop.permute.xlu0 %276 }
 0x571   :  { %v1031_v1 = vmul.f32 %v835_v52, %v277_v0 }
 0x573   :  { %285 = vrot.lane.b32.xlu1 %v1031_v1, %s854_s27 }
 0x5e5   :  { %v1035_v3 = vpop.permute.xlu1 %285 }
 0x5e6   :  { %774 = vmatmul.mubr.msk.f32.vlgmr.msra.gmra.mxu0 %vm164_vm4, %v1035_v3 }
 0x5e7   :  { %799 = vmatprep.mubr.msk.f32.mxu0 %vm850_vm0, %v849_v2  ;;  %784 = vmatpush3.msra.mxu0 %v467_v21 }
 0x5e8   :  { %785 = vmatprep.subr.mxu0 %v849_v2 }
 0x5e9   :  { %786 = vmatpush3.msra.mxu0 %v466_v22 }
 0x5ea   :  { %787 = vmatprep.subr.mxu0 %v849_v2 }
 0x5eb   :  { %788 = vmatpush3.msra.mxu0 %v465_v23 }
 0x5ec   :  { %789 = vmatprep.subr.mxu0 %v849_v2 }
 0x5ed   :  { %790 = vmatpush3.msra.mxu0 %v464_v24 }
 0x5ee   :  { %791 = vmatprep.subr.mxu0 %v849_v2 }
 0x5ef   :  { %792 = vmatpush3.msra.mxu0 %v463_v25 }
 0x5f0   :  { %793 = vmatprep.subr.mxu0 %v849_v2 }
 0x5f1   :  { %794 = vmatpush3.msra.mxu0 %v462_v26 }
 0x5f2   :  { %795 = vmatprep.subr.mxu0 %v849_v2 }
 0x5f3   :  { %796 = vmatpush3.msra.mxu0 %v461_v27 }
 0x5f4   :  { %797 = vmatprep.subr.mxu0 %v849_v2 }
 0x5f5   :  { %798 = vmatpush3.msra.mxu0 %v460_v28 }
 0x6a6   :  { %v355_v7 = vpop.f32.mrf.mxu0 }
 0x6a7   :  { %v366_v8 = vsel %vm365_vm8, %v355_v7, -1e+30 }
 0x6a8   :  { %v775_v9 = vpop.f32.mrf.mxu0  ;;  %v368_v12 = vsel %vm367_vm9, %v366_v8, -inf }
 0x6a9   :  { %369 = vmax.xlane.f32.xlu0 %v368_v12 }
 0x732   :  { %v370_v13 = vpop.xlane.xlu0 %369 }
 0x733   :  { %v371_v14 = vsub.f32 %v366_v8, %v370_v13 }
 0x735   :  { %v372_v15 = vmul.f32 1.442695, %v371_v14 }
 0x737   :  { %838 = vpow2.f32 %v372_v15 }
 0x744   :  { %v839_v10 = vpop.eup %838 }
 0x745   :  { %v374_v16 = vsel %vm367_vm9, %v839_v10, 0.0 }
 0x746   :  { %375 = vadd.xlane.f32.xlu1 %v374_v16 }
 0x7cf   :  { %v376_v18 = vpop.xlane.xlu1 %375 }
 0x7d0   :  { %840 = vrcp.f32 %v376_v18 }
 0x7dd   :  { %v841_v19 = vpop.eup %840 }
 0x7de   :  { %v378_v20 = vmul.f32 %v841_v19, %v839_v10 }
 0x7e0   :  { %781 = vmatmul.mubr.msk.f32.vlgmr.msra.gmra.mxu1 %vm46_vm2, %v378_v20 }
 0x7e1   :  { %810 = vmatprep.mubr.msk.f32.mxu1 %vm850_vm0, %v849_v2  ;;  %803 = vmatpush3.msra.mxu1 %v550_v34 }
 0x7e2   :  { %804 = vmatprep.subr.mxu1 %v849_v2 }
 0x7e3   :  { %805 = vmatpush3.msra.mxu1 %v549_v35 }
 0x7e4   :  { %806 = vmatprep.subr.mxu1 %v849_v2 }
 0x8a0   :  { %v450_v29 = vpop.f32.mrf.mxu1 }
 0x8a1   :  { %456 = vrot.lane.b32.xlu0 %v450_v29, %s854_s27 }
 0x8a2   :  { %v782_v31 = vpop.f32.mrf.mxu1 }
 0x8a5   :  { %645 = vrot.lane.b32.xlu0 %v959_v30, %s854_s27  ;;  %v548_v30 = vld [vmem:[%s1137_s5 + $0x48] sm:$0xff] }
 0x8a6   :  { %807 = vmatpush3.msra.mxu1 %v548_v30 }
 0x8a7   :  { %808 = vmatprep.subr.mxu1 %v849_v2 }
 0x8a8   :  { %809 = vmatpush3.msra.mxu1 %v547_v36 }
 0x8a9   :  { %649 = vrot.lane.b32.xlu0 %v1011_v58, %s852_s25  ;;  %v665_v58 = vunpack.c.l.s4 %v855_v57 }
 0x8ab   :  { %v666_v61 = vunpack.c.0.s8 %v665_v58 }
 0x8ad   :  { %v669_v63 = vsub.s32 %v666_v61, %v1042_v4 }
 0x913   :  { %v457_v32 = vpop.permute.xlu0 %456 }
 0x914   :  { %v459_v33 = vsel %vm164_vm4, %v1035_v3, %v457_v32 }
 0x915   :  { %800 = vmatmul.mubr.msk.f32.vlgmr.msra.gmra.mxu0 %vm179_vm5, %v459_v33 }
 0x917   :  { %v646_v55 = vpop.permute.xlu0 %645 }
 0x91b   :  { %v650_v60 = vpop.permute.xlu0 %649 }
 0x9d5   :  { %v542_v38 = vpop.f32.mrf.mxu0 }
 0x9d6   :  { %v543_v39 = vadd.f32 %v689_v37, %v542_v38 }
 0x9d7   :  { %v801_v40 = vpop.f32.mrf.mxu0 }
 0x9d8   :  { %842 = vtanh.f32 %v543_v39 }
 0x9e5   :  { %v843_v41 = vpop.eup %842 }
 0x9e6   :  { %811 = vmatmul.mubr.msk.f32.vlgmr.msra.gmra.mxu1 %vm164_vm4, %v843_v41 }
 0xaa6   :  { %v625_v44 = vpop.f32.mrf.mxu1 }
 0xaa7   :  { %v626_v45 = vadd.f32 %v691_v43, %v625_v44 }
 0xaa8   :  { %v812_v2 = vpop.f32.mrf.mxu1 }
 0xaa9   :  { %v630_v46 = vsel %vm629_vm10, %v626_v45, -inf }
 0xaaa   :  { %631 = vmax.xlane.f32.xlu1 %v630_v46 }
 0xb33   :  { %v632_v47 = vpop.xlane.xlu1 %631 }
 0xb34   :  { %v633_v48 = vsub.f32 %v626_v45, %v632_v47 }
 0xb36   :  { %v634_v49 = vmul.f32 1.442695, %v633_v48 }
 0xb38   :  { %844 = vpow2.f32 %v634_v49 }
 0xb45   :  { %v845_v50 = vpop.eup %844 }
 0xb46   :  { %v636_v51 = vsel %vm629_vm10, %v845_v50, 0.0 }
 0xb47   :  { %637 = vadd.xlane.f32.xlu1 %v636_v51 }
 0xb58   :  { %641 = vrot.lane.b32.xlu1 %v1031_v1, %s852_s25 }
 0xbd0   :  { %v638_v52 = vpop.xlane.xlu1 %637 }
 0xbd1   :  { %846 = vrcp.f32 %v638_v52 }
 0xbd4   :  { %v642_v56 = vpop.permute.xlu1 %641 }
 0xbd5   :  { %v656_v59 = vsel %vm164_vm4, %v998_v42, %v642_v56 }
 0xbd6   :  { %v657_v62 = vsel %vm179_vm5, %v656_v59, %v646_v55 }
 0xbd7   :  { %v659_v1 = vsel %vm658_vm11, %v657_v62, %v650_v60 }
 0xbde   :  { %v847_v53 = vpop.eup %846 }
 0xbdf   :  { %v640_v54 = vmul.f32 %v847_v53, %v845_v50 }
 0xbe1   :  { %653 = vrot.lane.b32.xlu0 %v640_v54, %s854_s27 }
 0xc53   :  { %v654_v0 = vpop.permute.xlu0 %653 }
 0xc54   :  { %v660_v3 = vsel %vm164_vm4, %v626_v45, %v654_v0 }
 0xc55   :  { %v663_v5 = vcombine.low %v659_v1, %v660_v3 }
 0xc57   :  { %v670_v6 = vrot.slane %v663_v5, %v669_v63 }
 0xc59   :  { %675 = vst.msk [vmem:[%s1139_s9] sm:$0xf] %vm674_vm14, %v670_v6 }

</bundles_post_ra>
